<compile_context>
chip_gen: v5e
topology: v5e:2x2
jax: 0.10.0
libtpu: 0.0.40
codegen_flags: <defaults>
</compile_context>

<pallas_src>
import jax
import jax.numpy as jnp
from jax.experimental import pallas as pl
from jax.experimental.pallas import tpu as pltpu


def _round_up(x, m):
    return (x + m - 1) // m * m


# ----------------------------- Pallas kernel -----------------------------

def _conv3_same_kernel(x_ref, w_ref, b_ref, o_ref):
    """Conv1d(k=3, 'same') + bias for one batch element in (C, T) layout.

    x_ref : (Cin, T)            input tile (cast to bf16 for the MXU)
    w_ref : (3*Cp, Cin) bf16    M-stacked taps; rows [0:Cp]   -> tap 0 (x[t-1])
                                               rows [Cp:2Cp]  -> tap 1 (x[t])
                                               rows [2Cp:3Cp] -> tap 2 (x[t+1])
    b_ref : (Cp, 1) f32         bias, zero-padded to Cp rows
    o_ref : (Cout, T)           output tile (lane-dense: T is the last dim)
    """
    Cout, T = o_ref.shape
    Cp = w_ref.shape[0] // 3          # padded per-tap Cout block (multiple of 8)

    x = x_ref[...].astype(jnp.bfloat16)                               # (Cin, T)

    # Single MXU pass for all three taps.
    y = jnp.dot(w_ref[...], x, preferred_element_type=jnp.float32)    # (3*Cp, T)
    y_l = y[0:Cp]          # needs x[t-1]
    y_c = y[Cp:2 * Cp]     # center tap
    y_r = y[2 * Cp:3 * Cp]  # needs x[t+1]

    col = jax.lax.broadcasted_iota(jnp.int32, (Cp, T), 1)
    # contribution[:, t] = y_l[:, t-1]  (zero at t = 0)
    left = jnp.where(col == 0, 0.0, pltpu.roll(y_l, shift=1, axis=1))
    # contribution[:, t] = y_r[:, t+1]  (zero at t = T-1); roll by T-1 == roll by -1
    right = jnp.where(col == T - 1, 0.0, pltpu.roll(y_r, shift=T - 1, axis=1))

    out = y_c + left + right + b_ref[...]                             # (Cp, T) f32
    o_ref[...] = out[:Cout].astype(o_ref.dtype)


# ----------------------------- wrapper -----------------------------

def conf_head_forward(x, weight, bias):
    """x: (B, Cin, T); weight: (Cout, Cin, 3); bias: (Cout,) -> (B, Cout, T).

    Output dtype follows x.dtype (supply bf16 x to halve activation DMA bytes).
    """
    B, Cin, T = x.shape
    Cout = weight.shape[0]
    Cp = _round_up(Cout, 8)            # pad each tap block to a sublane multiple

    # (Cout, Cin, 3) -> (3, Cout, Cin) -> zero-pad Cout -> (3*Cp, Cin) bf16.
    # Done once on the tiny weight array; kernel does a single M-stacked matmul.
    w_taps = jnp.transpose(weight, (2, 0, 1))                      # (3, Cout, Cin)
    w_taps = jnp.pad(w_taps, ((0, 0), (0, Cp - Cout), (0, 0)))     # (3, Cp, Cin)
    w_stack = w_taps.reshape(3 * Cp, Cin).astype(jnp.bfloat16)

    b_col = jnp.pad(bias.astype(jnp.float32), (0, Cp - Cout)).reshape(Cp, 1)

    cost = pl.CostEstimate(
        flops=2 * 3 * Cout * Cin * T * B,
        transcendentals=0,
        bytes_accessed=(x.size * x.dtype.itemsize
                        + w_stack.size * 2
                        + b_col.size * 4
                        + B * Cout * T * x.dtype.itemsize),
    )

    return pl.pallas_call(
        _conv3_same_kernel,
        out_shape=jax.ShapeDtypeStruct((B, Cout, T), x.dtype),
        grid=(B,),
        in_specs=[
            pl.BlockSpec((None, Cin, T), lambda b: (b, 0, 0)),      # activation tile
            pl.BlockSpec((3 * Cp, Cin), lambda b: (0, 0)),          # stacked weights
            pl.BlockSpec((Cp, 1), lambda b: (0, 0)),                # bias
        ],
        out_specs=pl.BlockSpec((None, Cout, T), lambda b: (b, 0, 0)),
        compiler_params=pltpu.CompilerParams(dimension_semantics=("parallel",)),
        cost_estimate=cost,
    )(x, w_stack, b_col)


# ----------------------------- pure-JAX references -----------------------------

def conf_head_ref(x, weight, bias, *, cast_bf16=False):
    """Conv1d(k=3, padding=1) + bias in NCL layout.

    cast_bf16=True reproduces the kernel's operand rounding (bf16 operands,
    f32 accumulation) for a tight numerical check.
    """
    B, Cin, T = x.shape
    if cast_bf16:
        xr = x.astype(jnp.bfloat16)
        wr = weight.astype(jnp.bfloat16)
    else:
        xr, wr = x, weight
    xp = jnp.pad(xr, ((0, 0), (0, 0), (1, 1)))
    y = sum(
        jnp.einsum("oc,bct->bot", wr[:, :, k], xp[:, :, k:k + T],
                   preferred_element_type=jnp.float32)
        for k in range(3)
    )
    return y + bias.astype(jnp.float32)[None, :, None]


# ----------------------------- main -----------------------------

if __name__ == "__main__":
    B, C_IN, T, NUM_CLASSES = 2, 512, 256, 34   # module defaults: in=512, classes=34
    key = jax.random.PRNGKey(0)
    kx, kw, kb = jax.random.split(key, 3)

    x = jax.random.normal(kx, (B, C_IN, T), jnp.float32)
    w_std = (2.0 / (NUM_CLASSES * 3)) ** 0.5            # kaiming-normal(fan_out)
    weight = jax.random.normal(kw, (NUM_CLASSES, C_IN, 3), jnp.float32) * w_std
    bias = jax.random.normal(kb, (NUM_CLASSES,), jnp.float32) * 0.1

    out = conf_head_forward(x, weight, bias)
    jax.block_until_ready(out)
    assert out.shape == (B, NUM_CLASSES, T)

    # Tight check: reference with identical bf16-operand / f32-accumulate math.
    ref_b16 = conf_head_ref(x, weight, bias, cast_bf16=True)
    assert jnp.allclose(out, ref_b16, atol=5e-3, rtol=5e-3), "mismatch vs bf16-matched ref"

    # Loose sanity check against full-precision Conv1d semantics (bf16 rounding error).
    ref_f32 = conf_head_ref(x, weight, bias, cast_bf16=False)
    assert jnp.allclose(out, ref_f32, atol=2e-1, rtol=5e-2), "mismatch vs f32 ref"

    print("KERNEL_OK")
</pallas_src>

<mosaic_0001>
module attributes {stable_mosaic.version = 11 : i64} {
  func.func @_conv3_same_kernel(%arg0: i32, %arg1: memref<1x512x256xf32, #tpu.memory_space<vmem>>, %arg2: memref<120x512xbf16, #tpu.memory_space<vmem>>, %arg3: memref<40x1xf32, #tpu.memory_space<vmem>>, %arg4: memref<1x34x256xf32, #tpu.memory_space<vmem>>) attributes {dimension_semantics = [#tpu.dimension_semantics<parallel>], iteration_bounds = array<i64: 2>, scalar_prefetch = 0 : i64, scratch_operands = 0 : i64, tpu.core_type = #tpu.core_type<tc>, window_params = [{transform_indices = @transform_0, window_bounds = array<i64: 1, 512, 256>}, {pipeline_mode = #tpu.pipeline_mode<synchronous>, transform_indices = @transform_1, window_bounds = array<i64: 120, 512>}, {pipeline_mode = #tpu.pipeline_mode<synchronous>, transform_indices = @transform_2, window_bounds = array<i64: 40, 1>}, {transform_indices = @transform_3, window_bounds = array<i64: 1, 34, 256>}]} {
    %c0 = arith.constant 0 : index
    %c0_0 = arith.constant 0 : index
    %c0_1 = arith.constant 0 : index
    %0 = vector.load %arg1[%c0, %c0_0, %c0_1] : memref<1x512x256xf32, #tpu.memory_space<vmem>>, vector<1x512x256xf32>
    %1 = vector.shape_cast %0 : vector<1x512x256xf32> to vector<512x256xf32>
    %2 = arith.truncf %1 : vector<512x256xf32> to vector<512x256xbf16>
    %c0_2 = arith.constant 0 : index
    %c0_3 = arith.constant 0 : index
    %3 = vector.load %arg2[%c0_2, %c0_3] : memref<120x512xbf16, #tpu.memory_space<vmem>>, vector<120x512xbf16>
    %cst = arith.constant dense<0.000000e+00> : vector<120x256xf32>
    %4 = tpu.matmul %3, %2, %cst {dimension_numbers = #tpu.dot_dimension_numbers<[1], [0], [0], [1], [0, 0, 1, 1], [], []>} : vector<120x512xbf16>, vector<512x256xbf16>, vector<120x256xf32> -> vector<120x256xf32>
    %5 = vector.extract_strided_slice %4 {offsets = [0, 0], sizes = [40, 256], strides = [1, 1]} : vector<120x256xf32> to vector<40x256xf32>
    %6 = vector.extract_strided_slice %4 {offsets = [40, 0], sizes = [40, 256], strides = [1, 1]} : vector<120x256xf32> to vector<40x256xf32>
    %7 = vector.extract_strided_slice %4 {offsets = [80, 0], sizes = [40, 256], strides = [1, 1]} : vector<120x256xf32> to vector<40x256xf32>
    %8 = tpu.iota {dimensions = array<i32: 1>} : vector<40x256xi32>
    %c0_i32 = arith.constant 0 : i32
    %9 = vector.broadcast %c0_i32 : i32 to vector<40x256xi32>
    %10 = arith.cmpi eq, %8, %9 : vector<40x256xi32>
    %c1_i32 = arith.constant 1 : i32
    %11 = tpu.dynamic_rotate %5 by %c1_i32 dim 1 : vector<40x256xf32>, i32 -> vector<40x256xf32>
    %cst_4 = arith.constant 0.000000e+00 : f32
    %12 = vector.broadcast %cst_4 : f32 to vector<40x256xf32>
    %13 = arith.select %10, %12, %11 : vector<40x256xi1>, vector<40x256xf32>
    %c255_i32 = arith.constant 255 : i32
    %14 = vector.broadcast %c255_i32 : i32 to vector<40x256xi32>
    %15 = arith.cmpi eq, %8, %14 : vector<40x256xi32>
    %c255_i32_5 = arith.constant 255 : i32
    %16 = tpu.dynamic_rotate %7 by %c255_i32_5 dim 1 : vector<40x256xf32>, i32 -> vector<40x256xf32>
    %cst_6 = arith.constant 0.000000e+00 : f32
    %17 = vector.broadcast %cst_6 : f32 to vector<40x256xf32>
    %18 = arith.select %15, %17, %16 : vector<40x256xi1>, vector<40x256xf32>
    %19 = arith.addf %6, %13 : vector<40x256xf32>
    %20 = arith.addf %19, %18 : vector<40x256xf32>
    %c0_7 = arith.constant 0 : index
    %c0_8 = arith.constant 0 : index
    %21 = vector.load %arg3[%c0_7, %c0_8] : memref<40x1xf32, #tpu.memory_space<vmem>>, vector<40x1xf32>
    %22 = vector.broadcast %21 : vector<40x1xf32> to vector<40x256xf32>
    %23 = arith.addf %20, %22 : vector<40x256xf32>
    %24 = vector.extract_strided_slice %23 {offsets = [0, 0], sizes = [34, 256], strides = [1, 1]} : vector<40x256xf32> to vector<34x256xf32>
    %c0_9 = arith.constant 0 : index
    %c0_10 = arith.constant 0 : index
    %c0_11 = arith.constant 0 : index
    %25 = vector.load %arg4[%c0_9, %c0_10, %c0_11] : memref<1x34x256xf32, #tpu.memory_space<vmem>>, vector<1x34x256xf32>
    %26 = vector.shape_cast %25 : vector<1x34x256xf32> to vector<34x256xf32>
    %27 = vector.shape_cast %24 : vector<34x256xf32> to vector<1x34x256xf32>
    tpu.vector_store %arg4[%c0_9, %c0_10, %c0_11], %27 {strides = array<i32>} : memref<1x34x256xf32, #tpu.memory_space<vmem>>, vector<1x34x256xf32>,
    return
  }
  func.func @transform_0(%arg0: i32) -> (i32, i32, i32) {
    %c0_i32 = arith.constant 0 : i32
    %c0_i32_0 = arith.constant 0 : i32
    %c0_i32_1 = arith.constant 0 : i32
    return %arg0, %c0_i32, %c0_i32_0 : i32, i32, i32
  }
  func.func @transform_1(%arg0: i32) -> (i32, i32) {
    %c0_i32 = arith.constant 0 : i32
    %c0_i32_0 = arith.constant 0 : i32
    %c0_i32_1 = arith.constant 0 : i32
    return %c0_i32, %c0_i32_0 : i32, i32
  }
  func.func @transform_2(%arg0: i32) -> (i32, i32) {
    %c0_i32 = arith.constant 0 : i32
    %c0_i32_0 = arith.constant 0 : i32
    %c0_i32_1 = arith.constant 0 : i32
    return %c0_i32, %c0_i32_0 : i32, i32
  }
  func.func @transform_3(%arg0: i32) -> (i32, i32, i32) {
    %c0_i32 = arith.constant 0 : i32
    %c0_i32_0 = arith.constant 0 : i32
    %c0_i32_1 = arith.constant 0 : i32
    return %arg0, %c0_i32, %c0_i32_0 : i32, i32, i32
  }
}

</mosaic_0001>

<bundles_post_ra>
// kernel: tpu_custom_call.1
= control target key start
LH: loop header
LB: loop body
LE: loop exit
PB: predicated region body
PF: predicated region fallthrough
CT: control target
= control target key end

     0   :  { %8 = vsyncpa [#allocation3], 0  ;;  %s2078_s0 = inlined_call_operand.hbm [shape: f32[2,512,256], index: 0, kind: input, shape index: {}]   ;;  %s2079_s1 = inlined_call_operand.hbm [shape: bf16[120,512], index: 1, kind: input, shape index: {}]   ;;  %s2080_s2 = inlined_call_operand.vmem [shape: f32[40,1], index: 2, kind: input, shape index: {}]   ;;  %s2081_s3 = inlined_call_operand.vmem [shape: f32[2,34,256], index: 3, kind: output, shape index: {}]  }
   0x1   :  { %10 = vsyncpa [#allocation3 + $0x1], 0 }
   0x2   :  { %11 = vsyncpa [#allocation5], 0  ;;  %s1545_s12 = smov 0   ;;  %s1547_s13 = smov 0  }
   0x3   :  { %s1549_s14 = smov 0   ;;  %s1551_s15 = smov 0  }
   0x4 LB: > { %s1564_s16 = sadd.s32 4294967295, %s1517_s15   ;;  %p37_p0 = scmp.ne.s32.totalorder %s1509_s13, %s1505_s12  ;;  %s1517_s15 = sphi %s1551_s15, %s2088_s15   ;;  %s1513_s14 = sphi %s1549_s14, %s2087_s14   ;;  %s1509_s13 = sphi %s1547_s13, %s2086_s13   ;;  %s1505_s12 = sphi %s1545_s12, %s2085_s12  }
   0x5   : > { %p38_p1 = scmp.eq.s32.totalorder %s1564_s16, 0  ;;  %p1207_p2 = scmp.ge.s32.totalorder %s1517_s15, 1 }
   0x6   : > { %p116_p3 = scmp.lt.s32.totalorder %s1517_s15, 3  ;;  %s127_s20 = sshll.u32 %s2079_s1, 4  ;;  %s128_s20 = int_to_ptr.hbm [resolvable:$true] %s127_s20 }
   0x7   : > { %p1572_p4 = por %p38_p1, %p37_p0  ;;  %s1519_s22 = smov [#allocation4]  }
   0x8   : > { %p1579_p5 = pnand %p1207_p2, %p116_p3  ;;  %s129_s23 = sshll.u32 %s1519_s22, 4  ;;  %s130_s23 = int_to_ptr.vmem [resolvable:$true] %s129_s23 }
   0x9   : > { %s1588_s24 = sadd.s32 1, %s1517_s15   ;;  %s1520_s25 = smov 256  }
   0xa   : > { %p1367_p6 = pneg %p1579_p5  ;;  %s1521_s26 = smov 16  }
   0xb   : > { %s21_s27 = ssub.s32 %s1517_s15, %s1588_s24  ;;  %s24_s28 = sadd.s32 1, %s1513_s14 }
   0xc   : > { %p1368_p7 = pnand %p1367_p6, %p38_p1  ;;  %p22_p8 = scmp.eq.s32.totalorder %s21_s27, 0 }
   0xd   : > { %p31_p9 = scmp.ne.s32.totalorder %s1513_s14, %s1509_s13  ;;  %p32_p10 = scmp.eq.s32.totalorder %s1517_s15, 0 }
   0xe   : > { %1370 = dma.hbm_to_vmem [thread:$0]  (!%p1368_p7), %s128_s20, 3840, %s130_s23, [#allocation5], %s1520_s25, %s1520_s25, %s1521_s26  }
   0xf   : > { %p1376_p11 = scmp.lt.s32.totalorder %s1517_s15, 2  ;;  %p33_p12 = por %p32_p10, %p31_p9 }
  0x10   : > { %s1601_s29 = scalar_select %p22_p8, %s1513_s14, %s24_s28  }
  0x11   : > { %s146_s30 = sand.u32 1, %s1513_s14   ;;  %s1331_s5 = sshll.u32 %s1517_s15, 10 }
  0x12   : > { %s1210_s4 = sshll.u32 %s146_s30, 10  ;;  %s155_s8 = scalar_lea.hbm %s2078_s0, %s1331_s5 }
  0x13   : > { %s150_s9 = scalar_lea.vmem [#allocation2], %s1210_s4  ;;  %s156_s11 = sshll.u32 %s155_s8, 4  ;;  %s157_s11 = int_to_ptr.hbm [resolvable:$true] %s156_s11 }
  0x14   : > { %s158_s10 = sshll.u32 %s150_s9, 4  ;;  %p1608_p13 = pnand %p1376_p11, %p33_p12  ;;  %s159_s10 = int_to_ptr.vmem [resolvable:$true] %s158_s10 }
  0x15   : > { %s147_s18 = scalar_lea.sflag [#allocation3], %s146_s30  ;;  %s1449_s19 = sshra.s32 %s157_s11, 4  ;;  %s1450_s19 = int_to_ptr.hbm [resolvable:$true] %s1449_s19 }
  0x16   : > { %s1451_s20 = scalar_lea.hbm %s1450_s19, 1024  ;;  %p1453_p2 = pneg %p1608_p13 }
  0x17   : > { %p1452_p0 = scmp.ne.s32.totalorder %s1450_s19, %s1451_s20  ;;  %s1456_s23 = scalar_lea.hbm %s2078_s0, 2048 }
  0x18   : > { %p1457_p7 = scmp.lt.s32.totalorder %s1450_s19, %s2078_s0  ;;  %p1458_p8 = scmp.lt.s32.totalorder %s1456_s23, %s1451_s20 }
  0x19   : > { %p1454_p3 = pnand %p1453_p2, %p1452_p0 }
  0x1a   : > { %p1459_p9 = por %p1458_p8, %p1457_p7 }
  0x1b   : > { %p1455_p6 = pneg %p1454_p3 }
  0x1d   : > { %p1460_p10 = pnand %p1459_p9, %p1455_p6 }
  0x1f   : > { %1463 = shalt.err (!%p1460_p10)
}
  0x20   : > { %1374 = dma.hbm_to_vmem [thread:$0]  (!%p1608_p13), %s157_s11, 16384, %s159_s10, %s147_s18, %s1520_s25, %s1520_s25, %s1521_s26  }
  0x21   : > { %170 = sbr.rel (%p1579_p5) target bundleno = 580 (0x244), region = 32  ;;  %s172_s30 = sand.u32 (!%p1579_p5), 1, %s1509_s13  }
  0x22   : > { %s1214_s4 = sshll.u32 (!%p1579_p5), %s172_s30, 10  ;;  %s173_s5 = scalar_lea.sflag (!%p1579_p5), [#allocation3], %s172_s30 }
  0x23   : > { %s1628_s6 = scalar_lea.vmem (!%p1579_p5), [#allocation2], %s1214_s4 }
  0x26   : > { %1496 = dma.done.wait (%p1572_p4), %s173_s5, 16384  }
  0x27   : > { %1498 = vsyncadd (%p1572_p4), %s173_s5, 4294950912 }
  0x28   : > { %1500 = dma.done.wait (%p38_p1), [#allocation5], 3840  }
  0x29   : > { %1502 = vsyncadd (%p38_p1), [#allocation5], 4294963456  ;;  %v238_v0 = vld [vmem:[%s1628_s6 + $0xe0] sm:$0xff]  ;;  %v240_v1 = vld [vmem:[%s1628_s6 + $0xf0] sm:$0xff]  ;;  %s1523_s25 = smov 1   ;;  %s1524_s26 = smov 127  }
  0x2a   : > { %v270_v2 = vld [vmem:[%s1628_s6 + $0x1e0] sm:$0xff]  ;;  %v352_v3 = vpack.c.bf16 %v240_v1, %v238_v0  ;;  %v272_v4 = vld [vmem:[%s1628_s6 + $0x1f0] sm:$0xff]  ;;  %p205_p1 = scmp.lt.s32.totalorder %s1564_s16, 1 }
  0x2b   : > { %v302_v5 = vld [vmem:[%s1628_s6 + $0x2e0] sm:$0xff]  ;;  %v304_v6 = vld [vmem:[%s1628_s6 + $0x2f0] sm:$0xff]  ;;  %v368_v7 = vpack.c.bf16 %v272_v4, %v270_v2 }
  0x2c   : > { %v384_v8 = vpack.c.bf16 %v304_v6, %v302_v5  ;;  %v334_v9 = vld [vmem:[%s1628_s6 + $0x3e0] sm:$0xff]  ;;  %v336_v10 = vld [vmem:[%s1628_s6 + $0x3f0] sm:$0xff]  ;;  %586 = vmatpush.bf16.msra.mxu0 %v352_v3  ;;  %s2090_s16 = smov (!%p205_p1, %s1564_s16), 1 }
  0x2d   : > { %v234_v11 = vld [vmem:[%s1628_s6 + $0xc0] sm:$0xff]  ;;  %v400_v12 = vpack.c.bf16 %v336_v10, %v334_v9  ;;  %v236_v13 = vld [vmem:[%s1628_s6 + $0xd0] sm:$0xff]  ;;  %634 = vmatpush.bf16.msra.mxu1 %v368_v7  ;;  %s1360_s20 = smul.u32 80, %s2090_s16 }
  0x2e   : > { %v266_v14 = vld [vmem:[%s1628_s6 + $0x1c0] sm:$0xff]  ;;  %v268_v15 = vld [vmem:[%s1628_s6 + $0x1d0] sm:$0xff]  ;;  %682 = vmatpush.bf16.msra.mxu2 %v384_v8  ;;  %v350_v16 = vpack.c.bf16 %v236_v13, %v234_v11 }
  0x2f   : > { %v366_v17 = vpack.c.bf16 %v268_v15, %v266_v14  ;;  %v298_v18 = vld [vmem:[%s1628_s6 + $0x2c0] sm:$0xff]  ;;  %v300_v19 = vld [vmem:[%s1628_s6 + $0x2d0] sm:$0xff]  ;;  %730 = vmatpush.bf16.msra.mxu3 %v400_v12  ;;  %s1987_s22 = scalar_lea.vmem %s2081_s3, %s1360_s20 }
  0x30   : > { %v330_v20 = vld [vmem:[%s1628_s6 + $0x3c0] sm:$0xff]  ;;  %v382_v21 = vpack.c.bf16 %v300_v19, %v298_v18  ;;  %v332_v22 = vld [vmem:[%s1628_s6 + $0x3d0] sm:$0xff]  ;;  %587 = vmatpush.bf16.msra.mxu0 %v350_v16 }
  0x31   : > { %v230_v23 = vld [vmem:[%s1628_s6 + $0xa0] sm:$0xff]  ;;  %v232_v24 = vld [vmem:[%s1628_s6 + $0xb0] sm:$0xff]  ;;  %v398_v25 = vpack.c.bf16 %v332_v22, %v330_v20  ;;  %635 = vmatpush.bf16.msra.mxu1 %v366_v17 }
  0x32   : > { %v262_v26 = vld [vmem:[%s1628_s6 + $0x1a0] sm:$0xff]  ;;  %v264_v27 = vld [vmem:[%s1628_s6 + $0x1b0] sm:$0xff]  ;;  %v348_v29 = vpack.c.bf16 %v232_v24, %v230_v23  ;;  %683 = vmatpush.bf16.msra.mxu2 %v382_v21 }
  0x33   : > { %v294_v28 = vld [vmem:[%s1628_s6 + $0x2a0] sm:$0xff]  ;;  %v296_v30 = vld [vmem:[%s1628_s6 + $0x2b0] sm:$0xff]  ;;  %v364_v33 = vpack.c.bf16 %v264_v27, %v262_v26  ;;  %731 = vmatpush.bf16.msra.mxu3 %v398_v25 }
  0x34   : > { %v326_v31 = vld [vmem:[%s1628_s6 + $0x3a0] sm:$0xff]  ;;  %v328_v32 = vld [vmem:[%s1628_s6 + $0x3b0] sm:$0xff]  ;;  %v380_v34 = vpack.c.bf16 %v296_v30, %v294_v28  ;;  %588 = vmatpush.bf16.msra.mxu0 %v348_v29 }
  0x35   : > { %v226_v35 = vld [vmem:[%s1628_s6 + $0x80] sm:$0xff]  ;;  %v228_v36 = vld [vmem:[%s1628_s6 + $0x90] sm:$0xff]  ;;  %v396_v38 = vpack.c.bf16 %v328_v32, %v326_v31  ;;  %636 = vmatpush.bf16.msra.mxu1 %v364_v33  ;;  %v303_v32 = vld [vmem:[%s1628_s6 + $0x2e8] sm:$0xff] }
  0x36   : > { %v258_v37 = vld [vmem:[%s1628_s6 + $0x180] sm:$0xff]  ;;  %v260_v39 = vld [vmem:[%s1628_s6 + $0x190] sm:$0xff]  ;;  %v346_v44 = vpack.c.bf16 %v228_v36, %v226_v35  ;;  %684 = vmatpush.bf16.msra.mxu2 %v380_v34  ;;  %v305_v33 = vld [vmem:[%s1628_s6 + $0x2f8] sm:$0xff] }
  0x37   : > { %v290_v40 = vld [vmem:[%s1628_s6 + $0x280] sm:$0xff]  ;;  %v292_v41 = vld [vmem:[%s1628_s6 + $0x290] sm:$0xff]  ;;  %v362_v45 = vpack.c.bf16 %v260_v39, %v258_v37  ;;  %732 = vmatpush.bf16.msra.mxu3 %v396_v38  ;;  %v1227_v35 = vld [vmem:[#allocation4 + $0x8] sm:$0xf] }
  0x38   : > { %v322_v42 = vld [vmem:[%s1628_s6 + $0x380] sm:$0xff]  ;;  %v324_v43 = vld [vmem:[%s1628_s6 + $0x390] sm:$0xff]  ;;  %v378_v46 = vpack.c.bf16 %v292_v41, %v290_v40  ;;  %589 = vmatpush.bf16.msra.mxu0 %v346_v44  ;;  %v335_v36 = vld [vmem:[%s1628_s6 + $0x3e8] sm:$0xff]  ;;  %v385_v44 = vpack.c.bf16 %v305_v33, %v303_v32 }
  0x39   : > { %v222_v47 = vld [vmem:[%s1628_s6 + $0x60] sm:$0xff]  ;;  %v224_v48 = vld [vmem:[%s1628_s6 + $0x70] sm:$0xff]  ;;  %v394_v50 = vpack.c.bf16 %v324_v43, %v322_v42  ;;  %637 = vmatpush.bf16.msra.mxu1 %v362_v45  ;;  %v337_v37 = vld [vmem:[%s1628_s6 + $0x3f8] sm:$0xff] }
  0x3a   : > { %v254_v49 = vld [vmem:[%s1628_s6 + $0x160] sm:$0xff]  ;;  %v256_v51 = vld [vmem:[%s1628_s6 + $0x170] sm:$0xff]  ;;  %v344_v56 = vpack.c.bf16 %v224_v48, %v222_v47  ;;  %685 = vmatpush.bf16.msra.mxu2 %v378_v46  ;;  %v1335_v40 = vld [vmem:[#allocation4 + $0x14] sm:$0xf0] }
  0x3b   : > { %v286_v52 = vld [vmem:[%s1628_s6 + $0x260] sm:$0xff]  ;;  %v288_v53 = vld [vmem:[%s1628_s6 + $0x270] sm:$0xff]  ;;  %v360_v57 = vpack.c.bf16 %v256_v51, %v254_v49  ;;  %733 = vmatpush.bf16.msra.mxu3 %v394_v50  ;;  %v1333_v41 = vld [vmem:[#allocation4 + $0xc] sm:$0xf]  ;;  %v401_v49 = vpack.c.bf16 %v337_v37, %v335_v36 }
  0x3c   : > { %v318_v54 = vld [vmem:[%s1628_s6 + $0x360] sm:$0xff]  ;;  %v320_v55 = vld [vmem:[%s1628_s6 + $0x370] sm:$0xff]  ;;  %v376_v58 = vpack.c.bf16 %v288_v53, %v286_v52  ;;  %590 = vmatpush.bf16.msra.mxu0 %v344_v56  ;;  %v1229_v42 = vld [vmem:[#allocation4 + $0x18] sm:$0xf0] }
  0x3d   : > { %v218_v59 = vld [vmem:[%s1628_s6 + $0x40] sm:$0xff]  ;;  %v220_v60 = vld [vmem:[%s1628_s6 + $0x50] sm:$0xff]  ;;  %v392_v62 = vpack.c.bf16 %v320_v55, %v318_v54  ;;  %638 = vmatpush.bf16.msra.mxu1 %v360_v57  ;;  %v239_v45 = vld [vmem:[%s1628_s6 + $0xe8] sm:$0xff]  ;;  %v1716_v54 = vor.u32 %v1335_v40, %v1227_v35  ;;  %v1720_v57 = vor.u32 %v1333_v41, %v1229_v42 }
  0x3e   : > { %v250_v61 = vld [vmem:[%s1628_s6 + $0x140] sm:$0xff]  ;;  %v252_v63 = vld [vmem:[%s1628_s6 + $0x150] sm:$0xff]  ;;  %v342_v4 = vpack.c.bf16 %v220_v60, %v218_v59  ;;  %686 = vmatpush.bf16.msra.mxu2 %v376_v58  ;;  %v241_v46 = vld [vmem:[%s1628_s6 + $0xf8] sm:$0xff] }
  0x3f   : > { %v282_v0 = vld [vmem:[%s1628_s6 + $0x240] sm:$0xff]  ;;  %v284_v1 = vld [vmem:[%s1628_s6 + $0x250] sm:$0xff]  ;;  %v358_v5 = vpack.c.bf16 %v252_v63, %v250_v61  ;;  %734 = vmatpush.bf16.msra.mxu3 %v392_v62  ;;  %v271_v47 = vld [vmem:[%s1628_s6 + $0x1e8] sm:$0xff]  ;;  %v353_v58 = vpack.c.bf16 %v241_v46, %v239_v45 }
  0x40   : > { %v314_v2 = vld [vmem:[%s1628_s6 + $0x340] sm:$0xff]  ;;  %v316_v3 = vld [vmem:[%s1628_s6 + $0x350] sm:$0xff]  ;;  %v374_v6 = vpack.c.bf16 %v284_v1, %v282_v0  ;;  %591 = vmatpush.bf16.msra.mxu0 %v342_v4  ;;  %v273_v50 = vld [vmem:[%s1628_s6 + $0x1f8] sm:$0xff] }
  0x41   : > { %v214_v7 = vld [vmem:[%s1628_s6 + $0x20] sm:$0xff]  ;;  %v216_v8 = vld [vmem:[%s1628_s6 + $0x30] sm:$0xff]  ;;  %v390_v10 = vpack.c.bf16 %v316_v3, %v314_v2  ;;  %639 = vmatpush.bf16.msra.mxu1 %v358_v5  ;;  %v299_v51 = vld [vmem:[%s1628_s6 + $0x2c8] sm:$0xff]  ;;  %v369_v59 = vpack.c.bf16 %v273_v50, %v271_v47 }
  0x42   : > { %v246_v9 = vld [vmem:[%s1628_s6 + $0x120] sm:$0xff]  ;;  %v248_v11 = vld [vmem:[%s1628_s6 + $0x130] sm:$0xff]  ;;  %v340_v17 = vpack.c.bf16 %v216_v8, %v214_v7  ;;  %687 = vmatpush.bf16.msra.mxu2 %v374_v6  ;;  %v301_v52 = vld [vmem:[%s1628_s6 + $0x2d8] sm:$0xff] }
  0x43   : > { %v278_v12 = vld [vmem:[%s1628_s6 + $0x220] sm:$0xff]  ;;  %v280_v13 = vld [vmem:[%s1628_s6 + $0x230] sm:$0xff]  ;;  %v356_v21 = vpack.c.bf16 %v248_v11, %v246_v9  ;;  %735 = vmatpush.bf16.msra.mxu3 %v390_v10  ;;  %v331_v55 = vld [vmem:[%s1628_s6 + $0x3c8] sm:$0xff]  ;;  %v383_v60 = vpack.c.bf16 %v301_v52, %v299_v51 }
  0x44   : > { %v310_v14 = vld [vmem:[%s1628_s6 + $0x320] sm:$0xff]  ;;  %v312_v15 = vld [vmem:[%s1628_s6 + $0x330] sm:$0xff]  ;;  %v372_v22 = vpack.c.bf16 %v280_v13, %v278_v12  ;;  %592 = vmatpush.bf16.msra.mxu0 %v340_v17  ;;  %v333_v56 = vld [vmem:[%s1628_s6 + $0x3d8] sm:$0xff] }
  0x45   : > { %v210_v16 = vld [vmem:[%s1628_s6] sm:$0xff]  ;;  %v212_v18 = vld [vmem:[%s1628_s6 + $0x10] sm:$0xff]  ;;  %v388_v26 = vpack.c.bf16 %v312_v15, %v310_v14  ;;  %640 = vmatpush.bf16.msra.mxu1 %v356_v21  ;;  %v235_v61 = vld [vmem:[%s1628_s6 + $0xc8] sm:$0xff]  ;;  %v399_v63 = vpack.c.bf16 %v333_v56, %v331_v55 }
  0x46   : > { %v242_v19 = vld [vmem:[%s1628_s6 + $0x100] sm:$0xff]  ;;  %v244_v20 = vld [vmem:[%s1628_s6 + $0x110] sm:$0xff]  ;;  %v338_v34 = vpack.c.bf16 %v212_v18, %v210_v16  ;;  %688 = vmatpush.bf16.msra.mxu2 %v372_v22  ;;  %v237_v62 = vld [vmem:[%s1628_s6 + $0xd8] sm:$0xff] }
  0x47   : > { %v274_v23 = vld [vmem:[%s1628_s6 + $0x200] sm:$0xff]  ;;  %v276_v24 = vld [vmem:[%s1628_s6 + $0x210] sm:$0xff]  ;;  %v354_v38 = vpack.c.bf16 %v244_v20, %v242_v19  ;;  %736 = vmatpush.bf16.msra.mxu3 %v388_v26  ;;  %v267_v0 = vld [vmem:[%s1628_s6 + $0x1c8] sm:$0xff]  ;;  %v351_v2 = vpack.c.bf16 %v237_v62, %v235_v61 }
  0x48   : > { %v306_v25 = vld [vmem:[%s1628_s6 + $0x300] sm:$0xff]  ;;  %v308_v27 = vld [vmem:[%s1628_s6 + $0x310] sm:$0xff]  ;;  %v370_v39 = vpack.c.bf16 %v276_v24, %v274_v23  ;;  %593 = vmatpush.bf16.msra.mxu0 %v338_v34  ;;  %v269_v1 = vld [vmem:[%s1628_s6 + $0x1d8] sm:$0xff] }
  0x49   : > { %v1219_v28 = vld [vmem:[#allocation4] sm:$0xf]  ;;  %v1334_v29 = vld [vmem:[#allocation4 + $0xc] sm:$0xf0]  ;;  %v1332_v30 = vld [vmem:[#allocation4 + $0x4] sm:$0xf]  ;;  %v386_v43 = vpack.c.bf16 %v308_v27, %v306_v25  ;;  %641 = vmatpush.bf16.msra.mxu1 %v354_v38  ;;  %v367_v6 = vpack.c.bf16 %v269_v1, %v267_v0 }
  0x4a   : > { %v1221_v31 = vld [vmem:[#allocation4 + $0x10] sm:$0xf0]  ;;  %v1709_v48 = vor.u32 %v1334_v29, %v1219_v28  ;;  %689 = vmatpush.bf16.msra.mxu2 %v370_v39  ;;  %v295_v3 = vld [vmem:[%s1628_s6 + $0x2a8] sm:$0xff]  ;;  %v297_v4 = vld [vmem:[%s1628_s6 + $0x2b8] sm:$0xff] }
  0x4b   : > { %v1714_v53 = vor.u32 %v1332_v30, %v1221_v31  ;;  %737 = vmatpush.bf16.msra.mxu3 %v386_v43  ;;  %v327_v5 = vld [vmem:[%s1628_s6 + $0x3a8] sm:$0xff]  ;;  %v381_v7 = vpack.c.bf16 %v297_v4, %v295_v3  ;;  %v329_v8 = vld [vmem:[%s1628_s6 + $0x3b8] sm:$0xff]  ;;  %v1235_v16 = vld [vmem:[#allocation4 + $0x20] sm:$0xf] }
  0x4c   : > { %594 = vmatmul.bf16.vlgmr.msra.gmra.mxu0 %v1709_v48  ;;  %v231_v9 = vld [vmem:[%s1628_s6 + $0xa8] sm:$0xff]  ;;  %v233_v10 = vld [vmem:[%s1628_s6 + $0xb8] sm:$0xff]  ;;  %v397_v11 = vpack.c.bf16 %v329_v8, %v327_v5  ;;  %v1338_v17 = vld [vmem:[#allocation4 + $0x2c] sm:$0xf0] }
  0x4d   : > { %642 = vmatmul.bf16.vlgmr.msra.gmra.mxu1 %v1714_v53  ;;  %690 = vmatmul.bf16.vlgmr.msra.gmra.mxu2 %v1716_v54  ;;  %v263_v12 = vld [vmem:[%s1628_s6 + $0x1a8] sm:$0xff]  ;;  %v265_v13 = vld [vmem:[%s1628_s6 + $0x1b8] sm:$0xff]  ;;  %v349_v14 = vpack.c.bf16 %v233_v10, %v231_v9  ;;  %v1336_v18 = vld [vmem:[#allocation4 + $0x24] sm:$0xf]  ;;  %v1738_v24 = vor.u32 %v1338_v17, %v1235_v16 }
  0x4e   : > { %874 = vmatpush.bf16.msrb.mxu2 %v385_v44  ;;  %738 = vmatmul.bf16.vlgmr.msra.gmra.mxu3 %v1720_v57  ;;  %v365_v15 = vpack.c.bf16 %v265_v13, %v263_v12  ;;  %v1237_v19 = vld [vmem:[#allocation4 + $0x30] sm:$0xf0]  ;;  %v1243_v20 = vld [vmem:[#allocation4 + $0x28] sm:$0xf]  ;;  %v1339_v21 = vld [vmem:[#allocation4 + $0x34] sm:$0xf0] }
  0x4f   : > { %922 = vmatpush.bf16.msrb.mxu3 %v401_v49  ;;  %778 = vmatpush.bf16.msrb.mxu0 %v353_v58  ;;  %v1337_v22 = vld [vmem:[#allocation4 + $0x2c] sm:$0xf]  ;;  %v1245_v23 = vld [vmem:[#allocation4 + $0x38] sm:$0xf0]  ;;  %v1740_v25 = vor.u32 %v1336_v18, %v1237_v19  ;;  %v1742_v26 = vor.u32 %v1339_v21, %v1243_v20  ;;  %v1251_v40 = vld [vmem:[#allocation4 + $0x40] sm:$0xf] }
  0x50   : > { %826 = vmatpush.bf16.msrb.mxu1 %v369_v59  ;;  %v1744_v27 = vor.u32 %v1337_v22, %v1245_v23  ;;  %v291_v28 = vld [vmem:[%s1628_s6 + $0x288] sm:$0xff]  ;;  %v293_v29 = vld [vmem:[%s1628_s6 + $0x298] sm:$0xff]  ;;  %v1342_v41 = vld [vmem:[#allocation4 + $0x4c] sm:$0xf0] }
  0x51   : > { %v323_v30 = vld [vmem:[%s1628_s6 + $0x388] sm:$0xff]  ;;  %v379_v31 = vpack.c.bf16 %v293_v29, %v291_v28  ;;  %v325_v32 = vld [vmem:[%s1628_s6 + $0x398] sm:$0xff]  ;;  %v1340_v42 = vld [vmem:[#allocation4 + $0x44] sm:$0xf]  ;;  %v1758_v49 = vor.u32 %v1342_v41, %v1251_v40 }
  0x52   : > { %875 = vmatpush.bf16.msrb.mxu2 %v383_v60  ;;  %v227_v33 = vld [vmem:[%s1628_s6 + $0x88] sm:$0xff]  ;;  %v229_v34 = vld [vmem:[%s1628_s6 + $0x98] sm:$0xff]  ;;  %v395_v35 = vpack.c.bf16 %v325_v32, %v323_v30  ;;  %v1253_v43 = vld [vmem:[#allocation4 + $0x50] sm:$0xf0] }
  0x53   : > { %923 = vmatpush.bf16.msrb.mxu3 %v399_v63  ;;  %779 = vmatpush.bf16.msrb.mxu0 %v351_v2  ;;  %v347_v36 = vpack.c.bf16 %v229_v34, %v227_v33  ;;  %v259_v37 = vld [vmem:[%s1628_s6 + $0x188] sm:$0xff]  ;;  %v261_v38 = vld [vmem:[%s1628_s6 + $0x198] sm:$0xff]  ;;  %v1760_v50 = vor.u32 %v1340_v42, %v1253_v43  ;;  %v1267_v4 = vld [vmem:[#allocation4 + $0x60] sm:$0xf] }
  0x54   : > { %827 = vmatpush.bf16.msrb.mxu1 %v367_v6  ;;  %v363_v39 = vpack.c.bf16 %v261_v38, %v259_v37  ;;  %v1259_v44 = vld [vmem:[#allocation4 + $0x48] sm:$0xf]  ;;  %v1343_v45 = vld [vmem:[#allocation4 + $0x54] sm:$0xf0]  ;;  %v1341_v46 = vld [vmem:[#allocation4 + $0x4c] sm:$0xf] }
  0x55   : > { %v1261_v47 = vld [vmem:[#allocation4 + $0x58] sm:$0xf0]  ;;  %v1762_v51 = vor.u32 %v1343_v45, %v1259_v44  ;;  %v287_v55 = vld [vmem:[%s1628_s6 + $0x268] sm:$0xff]  ;;  %v1346_v5 = vld [vmem:[#allocation4 + $0x6c] sm:$0xf0] }
  0x56   : > { %876 = vmatpush.bf16.msrb.mxu2 %v381_v7  ;;  %v1764_v52 = vor.u32 %v1341_v46, %v1261_v47  ;;  %v289_v56 = vld [vmem:[%s1628_s6 + $0x278] sm:$0xff]  ;;  %v319_v58 = vld [vmem:[%s1628_s6 + $0x368] sm:$0xff]  ;;  %v1344_v6 = vld [vmem:[#allocation4 + $0x64] sm:$0xf]  ;;  %v1778_v12 = vor.u32 %v1346_v5, %v1267_v4 }
  0x57   : > { %924 = vmatpush.bf16.msrb.mxu3 %v397_v11  ;;  %780 = vmatpush.bf16.msrb.mxu0 %v349_v14  ;;  %v377_v59 = vpack.c.bf16 %v289_v56, %v287_v55  ;;  %v321_v60 = vld [vmem:[%s1628_s6 + $0x378] sm:$0xff]  ;;  %v223_v61 = vld [vmem:[%s1628_s6 + $0x68] sm:$0xff]  ;;  %v1269_v7 = vld [vmem:[#allocation4 + $0x70] sm:$0xf0] }
  0x58   : > { %828 = vmatpush.bf16.msrb.mxu1 %v365_v15  ;;  %v225_v62 = vld [vmem:[%s1628_s6 + $0x78] sm:$0xff]  ;;  %v393_v63 = vpack.c.bf16 %v321_v60, %v319_v58  ;;  %v255_v1 = vld [vmem:[%s1628_s6 + $0x168] sm:$0xff]  ;;  %v1780_v13 = vor.u32 %v1344_v6, %v1269_v7  ;;  %v1283_v32 = vld [vmem:[#allocation4 + $0x80] sm:$0xf] }
  0x59   : > { %v345_v0 = vpack.c.bf16 %v225_v62, %v223_v61  ;;  %v257_v2 = vld [vmem:[%s1628_s6 + $0x178] sm:$0xff]  ;;  %v1275_v8 = vld [vmem:[#allocation4 + $0x68] sm:$0xf]  ;;  %v1345_v10 = vld [vmem:[#allocation4 + $0x6c] sm:$0xf] }
  0x5a   : > { %877 = vmatpush.bf16.msrb.mxu2 %v379_v31  ;;  %v361_v3 = vpack.c.bf16 %v257_v2, %v255_v1  ;;  %v1347_v9 = vld [vmem:[#allocation4 + $0x74] sm:$0xf0]  ;;  %v1277_v11 = vld [vmem:[#allocation4 + $0x78] sm:$0xf0]  ;;  %v283_v16 = vld [vmem:[%s1628_s6 + $0x248] sm:$0xff] }
  0x5b   : > { %925 = vmatpush.bf16.msrb.mxu3 %v395_v35  ;;  %781 = vmatpush.bf16.msrb.mxu0 %v347_v36  ;;  %v1782_v14 = vor.u32 %v1347_v9, %v1275_v8  ;;  %v1784_v15 = vor.u32 %v1345_v10, %v1277_v11  ;;  %v285_v17 = vld [vmem:[%s1628_s6 + $0x258] sm:$0xff]  ;;  %v315_v18 = vld [vmem:[%s1628_s6 + $0x348] sm:$0xff]  ;;  %v1350_v33 = vld [vmem:[#allocation4 + $0x8c] sm:$0xf0] }
  0x5c   : > { %599 = vmatmul.bf16.gmra.mxu0 %v1738_v24  ;;  %829 = vmatpush.bf16.msrb.mxu1 %v363_v39  ;;  %v375_v19 = vpack.c.bf16 %v285_v17, %v283_v16  ;;  %v317_v20 = vld [vmem:[%s1628_s6 + $0x358] sm:$0xff]  ;;  %v219_v21 = vld [vmem:[%s1628_s6 + $0x48] sm:$0xff]  ;;  %v1348_v34 = vld [vmem:[#allocation4 + $0x84] sm:$0xf]  ;;  %v1798_v40 = vor.u32 %v1350_v33, %v1283_v32 }
  0x5d   : > { %647 = vmatmul.bf16.gmra.mxu1 %v1740_v25  ;;  %695 = vmatmul.bf16.gmra.mxu2 %v1742_v26  ;;  %v221_v22 = vld [vmem:[%s1628_s6 + $0x58] sm:$0xff]  ;;  %v391_v23 = vpack.c.bf16 %v317_v20, %v315_v18  ;;  %v251_v29 = vld [vmem:[%s1628_s6 + $0x148] sm:$0xff]  ;;  %v1285_v35 = vld [vmem:[#allocation4 + $0x90] sm:$0xf0] }
  0x5e   : > { %743 = vmatmul.bf16.gmra.mxu3 %v1744_v27  ;;  %878 = vmatpush.bf16.msrb.mxu2 %v377_v59  ;;  %v343_v28 = vpack.c.bf16 %v221_v22, %v219_v21  ;;  %v253_v30 = vld [vmem:[%s1628_s6 + $0x158] sm:$0xff]  ;;  %v1291_v36 = vld [vmem:[#allocation4 + $0x88] sm:$0xf]  ;;  %v1349_v38 = vld [vmem:[#allocation4 + $0x8c] sm:$0xf]  ;;  %v1800_v41 = vor.u32 %v1348_v34, %v1285_v35 }
  0x5f   : > { %926 = vmatpush.bf16.msrb.mxu3 %v393_v63  ;;  %782 = vmatpush.bf16.msrb.mxu0 %v345_v0  ;;  %v359_v31 = vpack.c.bf16 %v253_v30, %v251_v29  ;;  %v1351_v37 = vld [vmem:[#allocation4 + $0x94] sm:$0xf0]  ;;  %v1293_v39 = vld [vmem:[#allocation4 + $0x98] sm:$0xf0]  ;;  %v279_v44 = vld [vmem:[%s1628_s6 + $0x228] sm:$0xff] }
  0x60   : > { %830 = vmatpush.bf16.msrb.mxu1 %v361_v3  ;;  %v1802_v42 = vor.u32 %v1351_v37, %v1291_v36  ;;  %v1804_v43 = vor.u32 %v1349_v38, %v1293_v39  ;;  %v281_v45 = vld [vmem:[%s1628_s6 + $0x238] sm:$0xff]  ;;  %v311_v46 = vld [vmem:[%s1628_s6 + $0x328] sm:$0xff]  ;;  %v1299_v0 = vld [vmem:[#allocation4 + $0xa0] sm:$0xf] }
  0x61   : > { %v373_v47 = vpack.c.bf16 %v281_v45, %v279_v44  ;;  %v313_v55 = vld [vmem:[%s1628_s6 + $0x338] sm:$0xff]  ;;  %v215_v56 = vld [vmem:[%s1628_s6 + $0x28] sm:$0xff]  ;;  %v1354_v1 = vld [vmem:[#allocation4 + $0xac] sm:$0xf0] }
  0x62   : > { %879 = vmatpush.bf16.msrb.mxu2 %v375_v19  ;;  %v217_v58 = vld [vmem:[%s1628_s6 + $0x38] sm:$0xff]  ;;  %v389_v59 = vpack.c.bf16 %v313_v55, %v311_v46  ;;  %v247_v61 = vld [vmem:[%s1628_s6 + $0x128] sm:$0xff]  ;;  %v1352_v2 = vld [vmem:[#allocation4 + $0xa4] sm:$0xf]  ;;  %v1818_v8 = vor.u32 %v1354_v1, %v1299_v0 }
  0x63   : > { %927 = vmatpush.bf16.msrb.mxu3 %v391_v23  ;;  %783 = vmatpush.bf16.msrb.mxu0 %v343_v28  ;;  %v341_v60 = vpack.c.bf16 %v217_v58, %v215_v56  ;;  %v249_v62 = vld [vmem:[%s1628_s6 + $0x138] sm:$0xff]  ;;  %v1301_v3 = vld [vmem:[#allocation4 + $0xb0] sm:$0xf0]  ;;  %v1307_v4 = vld [vmem:[#allocation4 + $0xa8] sm:$0xf] }
  0x64   : > { %831 = vmatpush.bf16.msrb.mxu1 %v359_v31  ;;  %v357_v63 = vpack.c.bf16 %v249_v62, %v247_v61  ;;  %v1355_v5 = vld [vmem:[#allocation4 + $0xb4] sm:$0xf0]  ;;  %v1353_v6 = vld [vmem:[#allocation4 + $0xac] sm:$0xf]  ;;  %v1309_v7 = vld [vmem:[#allocation4 + $0xb8] sm:$0xf0]  ;;  %v1820_v9 = vor.u32 %v1352_v2, %v1301_v3 }
  0x65   : > { %v1822_v10 = vor.u32 %v1355_v5, %v1307_v4  ;;  %v1824_v11 = vor.u32 %v1353_v6, %v1309_v7  ;;  %v275_v16 = vld [vmem:[%s1628_s6 + $0x208] sm:$0xff]  ;;  %v277_v17 = vld [vmem:[%s1628_s6 + $0x218] sm:$0xff]  ;;  %v1315_v32 = vld [vmem:[#allocation4 + $0xc0] sm:$0xf]  ;;  %v1522_v5 = vmov 0  }
  0x66   : > { %880 = vmatpush.bf16.msrb.mxu2 %v373_v47  ;;  %v307_v18 = vld [vmem:[%s1628_s6 + $0x308] sm:$0xff]  ;;  %v371_v19 = vpack.c.bf16 %v277_v17, %v275_v16  ;;  %v309_v20 = vld [vmem:[%s1628_s6 + $0x318] sm:$0xff]  ;;  %v1358_v33 = vld [vmem:[#allocation4 + $0xcc] sm:$0xf0]  ;;  %1416 = vset.pattern.permute.xlu2 %v1522_v5 }
  0x67   : > { %928 = vmatpush.bf16.msrb.mxu3 %v389_v59  ;;  %784 = vmatpush.bf16.msrb.mxu0 %v341_v60  ;;  %v211_v21 = vld [vmem:[%s1628_s6 + $0x8] sm:$0xff]  ;;  %v213_v22 = vld [vmem:[%s1628_s6 + $0x18] sm:$0xff]  ;;  %v387_v23 = vpack.c.bf16 %v309_v20, %v307_v18  ;;  %v1356_v34 = vld [vmem:[#allocation4 + $0xc4] sm:$0xf]  ;;  %v1838_v44 = vor.u32 %v1358_v33, %v1315_v32 }
  0x68   : > { %832 = vmatpush.bf16.msrb.mxu1 %v357_v63  ;;  %v339_v28 = vpack.c.bf16 %v213_v22, %v211_v21  ;;  %v243_v29 = vld [vmem:[%s1628_s6 + $0x108] sm:$0xff]  ;;  %v245_v30 = vld [vmem:[%s1628_s6 + $0x118] sm:$0xff]  ;;  %v1317_v35 = vld [vmem:[#allocation4 + $0xd0] sm:$0xf0]  ;;  %1418 = vset.pattern.permute.xlu1 %v1522_v5 }
  0x69   : > { %v355_v31 = vpack.c.bf16 %v245_v30, %v243_v29  ;;  %v1323_v36 = vld [vmem:[#allocation4 + $0xc8] sm:$0xf]  ;;  %v1359_v37 = vld [vmem:[#allocation4 + $0xd4] sm:$0xf0]  ;;  %v1357_v38 = vld [vmem:[#allocation4 + $0xcc] sm:$0xf]  ;;  %v1840_v45 = vor.u32 %v1356_v34, %v1317_v35  ;;  %1417 = vset.pattern.permute.xlu0 %v1522_v5 }
  0x6a   : > { %881 = vmatpush.bf16.msrb.mxu2 %v371_v19  ;;  %v1325_v39 = vld [vmem:[#allocation4 + $0xd8] sm:$0xf0]  ;;  %v1842_v46 = vor.u32 %v1359_v37, %v1323_v36  ;;  %v430_v55 = vld [vmem:[#allocation4 + $0xe0] sm:$0xff]  ;;  %v431_v56 = vld [vmem:[#allocation4 + $0xe8] sm:$0xff] }
  0x6b   : > { %929 = vmatpush.bf16.msrb.mxu3 %v387_v23  ;;  %785 = vmatpush.bf16.msrb.mxu0 %v339_v28  ;;  %v1844_v47 = vor.u32 %v1357_v38, %v1325_v39  ;;  %v518_v58 = vunpack.c.l.b16 %v430_v55  ;;  %v519_v59 = vunpack.c.h.b16 %v430_v55  ;;  %v520_v60 = vunpack.c.l.b16 %v431_v56  ;;  %v1079_v4 = vld [vmem:[%s2080_s2] sm:$0xff] }
  0x6c   : > { %604 = vmatmul.bf16.gmra.mxu0 %v1758_v49  ;;  %833 = vmatpush.bf16.msrb.mxu1 %v355_v31  ;;  %v521_v61 = vunpack.c.h.b16 %v431_v56 }
  0x6d   : > { %652 = vmatmul.bf16.gmra.mxu1 %v1760_v50  ;;  %700 = vmatmul.bf16.gmra.mxu2 %v1762_v51  ;;  %v1850_v62 = vpack.c.b16 %v518_v58, %v518_v58  ;;  %v1852_v63 = vpack.c.b16 %v519_v59, %v519_v59  ;;  %v1854_v0 = vpack.c.b16 %v520_v60, %v520_v60 }
  0x6e   : > { %748 = vmatmul.bf16.gmra.mxu3 %v1764_v52  ;;  %v1856_v1 = vpack.c.b16 %v521_v61, %v521_v61  ;;  %1086 = vperm.xlu2 %1416, %v1079_v4  }
  0x7c   : > { %609 = vmatmul.bf16.gmra.mxu0 %v1778_v12 }
  0x7d   : > { %657 = vmatmul.bf16.gmra.mxu1 %v1780_v13  ;;  %705 = vmatmul.bf16.gmra.mxu2 %v1782_v14 }
  0x7e   : > { %753 = vmatmul.bf16.gmra.mxu3 %v1784_v15 }
  0x8c   : > { %614 = vmatmul.bf16.gmra.mxu0 %v1798_v40 }
  0x8d   : > { %662 = vmatmul.bf16.gmra.mxu1 %v1800_v41  ;;  %710 = vmatmul.bf16.gmra.mxu2 %v1802_v42 }
  0x8e   : > { %758 = vmatmul.bf16.gmra.mxu3 %v1804_v43 }
  0x9c   : > { %619 = vmatmul.bf16.gmra.mxu0 %v1818_v8 }
  0x9d   : > { %667 = vmatmul.bf16.gmra.mxu1 %v1820_v9  ;;  %715 = vmatmul.bf16.gmra.mxu2 %v1822_v10 }
  0x9e   : > { %763 = vmatmul.bf16.gmra.mxu3 %v1824_v11 }
  0xac   : > { %624 = vmatmul.bf16.gmra.mxu0 %v1838_v44 }
  0xad   : > { %672 = vmatmul.bf16.gmra.mxu1 %v1840_v45  ;;  %720 = vmatmul.bf16.gmra.mxu2 %v1842_v46 }
  0xae   : > { %768 = vmatmul.bf16.gmra.mxu3 %v1844_v47 }
  0xbc   : > { %629 = vmatmul.bf16.gmra.mxu0 %v1850_v62 }
  0xbd   : > { %677 = vmatmul.bf16.gmra.mxu1 %v1852_v63  ;;  %725 = vmatmul.bf16.gmra.mxu2 %v1854_v0 }
  0xbe   : > { %773 = vmatmul.bf16.gmra.mxu3 %v1856_v1 }
  0xc9   : > { %v595_v2 = vpop.f32.mrf.mxu0 }
  0xca   : > { %v643_v3 = vpop.f32.mrf.mxu1 }
  0xcb   : > { %v644_v6 = vadd.f32 %v643_v3, %v595_v2 }
  0xcc   : > { %786 = vmatmul.bf16.vlgmr.msrb.gmra.mxu0 %v1709_v48 }
  0xcd   : > { %834 = vmatmul.bf16.vlgmr.msrb.gmra.mxu1 %v1714_v53  ;;  %882 = vmatmul.bf16.vlgmr.msrb.gmra.mxu2 %v1716_v54 }
  0xce   : > { %930 = vmatmul.bf16.vlgmr.msrb.gmra.mxu3 %v1720_v57 }
  0xd0   : > { %v691_v7 = vpop.f32.mrf.mxu2 }
  0xd1   : > { %v692_v16 = vadd.f32 %v691_v7, %v644_v6  ;;  %v739_v17 = vpop.f32.mrf.mxu3  ;;  %v597_v18 = vpop.f32.mrf.mxu0 }
  0xd2   : > { %v645_v19 = vpop.f32.mrf.mxu1 }
  0xd3   : > { %v740_v20 = vadd.f32 %v739_v17, %v692_v16  ;;  %v646_v48 = vadd.f32 %v645_v19, %v597_v18 }
  0xd5   : > { %975 = vrot.lane.b32.xlu0 %v740_v20, %s1523_s25 }
  0xd8   : > { %v693_v21 = vpop.f32.mrf.mxu2 }
  0xd9   : > { %v694_v22 = vadd.f32 %v693_v21, %v646_v48  ;;  %v741_v53 = vpop.f32.mrf.mxu3  ;;  %v600_v23 = vpop.f32.mrf.mxu0 }
  0xda   : > { %v648_v54 = vpop.f32.mrf.mxu1 }
  0xdb   : > { %v742_v28 = vadd.f32 %v741_v53, %v694_v22  ;;  %v649_v57 = vadd.f32 %v648_v54, %v600_v23 }
  0xdc   : > { %791 = vmatmul.bf16.gmra.mxu0 %v1738_v24 }
  0xdd   : > { %839 = vmatmul.bf16.gmra.mxu1 %v1740_v25  ;;  %887 = vmatmul.bf16.gmra.mxu2 %v1742_v26 }
  0xde   : > { %935 = vmatmul.bf16.gmra.mxu3 %v1744_v27  ;;  %977 = vrot.lane.b32.xlu0 %v742_v28, %s1523_s25 }
  0xe0   : > { %v696_v29 = vpop.f32.mrf.mxu2 }
  0xe1   : > { %v697_v30 = vadd.f32 %v696_v29, %v649_v57  ;;  %v744_v31 = vpop.f32.mrf.mxu3  ;;  %v602_v32 = vpop.f32.mrf.mxu0 }
  0xe2   : > { %v650_v33 = vpop.f32.mrf.mxu1 }
  0xe3   : > { %v745_v34 = vadd.f32 %v744_v31, %v697_v30  ;;  %v651_v35 = vadd.f32 %v650_v33, %v602_v32 }
  0xe5   : > { %979 = vrot.lane.b32.xlu1 %v745_v34, %s1523_s25 }
  0xe8   : > { %v698_v36 = vpop.f32.mrf.mxu2 }
  0xe9   : > { %v699_v24 = vadd.f32 %v698_v36, %v651_v35  ;;  %v746_v37 = vpop.f32.mrf.mxu3  ;;  %v605_v38 = vpop.f32.mrf.mxu0 }
  0xea   : > { %v653_v25 = vpop.f32.mrf.mxu1 }
  0xeb   : > { %v747_v39 = vadd.f32 %v746_v37, %v699_v24  ;;  %v654_v26 = vadd.f32 %v653_v25, %v605_v38 }
  0xec   : > { %796 = vmatmul.bf16.gmra.mxu0 %v1758_v49 }
  0xed   : > { %844 = vmatmul.bf16.gmra.mxu1 %v1760_v50  ;;  %892 = vmatmul.bf16.gmra.mxu2 %v1762_v51 }
  0xee   : > { %940 = vmatmul.bf16.gmra.mxu3 %v1764_v52  ;;  %981 = vrot.lane.b32.xlu1 %v747_v39, %s1523_s25 }
  0xf0   : > { %v701_v27 = vpop.f32.mrf.mxu2 }
  0xf1   : > { %v702_v55 = vadd.f32 %v701_v27, %v654_v26  ;;  %v749_v56 = vpop.f32.mrf.mxu3  ;;  %v607_v58 = vpop.f32.mrf.mxu0 }
  0xf2   : > { %v655_v59 = vpop.f32.mrf.mxu1 }
  0xf3   : > { %v750_v60 = vadd.f32 %v749_v56, %v702_v55  ;;  %v656_v61 = vadd.f32 %v655_v59, %v607_v58 }
  0xf5   : > { %983 = vrot.lane.b32.xlu2 %v750_v60, %s1523_s25 }
  0xf8   : > { %v703_v2 = vpop.f32.mrf.mxu2 }
  0xf9   : > { %v704_v49 = vadd.f32 %v703_v2, %v656_v61  ;;  %v751_v3 = vpop.f32.mrf.mxu3  ;;  %v610_v4 = vpop.f32.mrf.mxu0 }
  0xfa   : > { %v658_v50 = vpop.f32.mrf.mxu1 }
  0xfb   : > { %v1882_v5 = vadd.f32 %v751_v3, %v704_v49  ;;  %v659_v51 = vadd.f32 %v658_v50, %v610_v4 }
  0xfc   : > { %801 = vmatmul.bf16.gmra.mxu0 %v1778_v12 }
  0xfd   : > { %849 = vmatmul.bf16.gmra.mxu1 %v1780_v13  ;;  %897 = vmatmul.bf16.gmra.mxu2 %v1782_v14 }
  0xfe   : > { %945 = vmatmul.bf16.gmra.mxu3 %v1784_v15 }
 0x100   : > { %v706_v52 = vpop.f32.mrf.mxu2 }
 0x101   : > { %v707_v6 = vadd.f32 %v706_v52, %v659_v51  ;;  %v754_v7 = vpop.f32.mrf.mxu3  ;;  %v612_v16 = vpop.f32.mrf.mxu0 }
 0x102   : > { %v660_v17 = vpop.f32.mrf.mxu1 }
 0x103   : > { %v1888_v18 = vadd.f32 %v754_v7, %v707_v6  ;;  %v661_v19 = vadd.f32 %v660_v17, %v612_v16 }
 0x108   : > { %v708_v20 = vpop.f32.mrf.mxu2 }
 0x109   : > { %v709_v48 = vadd.f32 %v708_v20, %v661_v19  ;;  %v756_v21 = vpop.f32.mrf.mxu3  ;;  %v615_v22 = vpop.f32.mrf.mxu0 }
 0x10a   : > { %v663_v53 = vpop.f32.mrf.mxu1 }
 0x10b   : > { %v1890_v12 = vadd.f32 %v756_v21, %v709_v48  ;;  %v664_v13 = vadd.f32 %v663_v53, %v615_v22 }
 0x10c   : > { %806 = vmatmul.bf16.gmra.mxu0 %v1798_v40 }
 0x10d   : > { %854 = vmatmul.bf16.gmra.mxu1 %v1800_v41  ;;  %902 = vmatmul.bf16.gmra.mxu2 %v1802_v42 }
 0x10e   : > { %950 = vmatmul.bf16.gmra.mxu3 %v1804_v43 }
 0x110   : > { %v711_v14 = vpop.f32.mrf.mxu2 }
 0x111   : > { %v712_v15 = vadd.f32 %v711_v14, %v664_v13  ;;  %v759_v23 = vpop.f32.mrf.mxu3  ;;  %v617_v54 = vpop.f32.mrf.mxu0 }
 0x112   : > { %v665_v28 = vpop.f32.mrf.mxu1 }
 0x113   : > { %v1896_v57 = vadd.f32 %v759_v23, %v712_v15  ;;  %v666_v29 = vadd.f32 %v665_v28, %v617_v54 }
 0x118   : > { %v713_v30 = vpop.f32.mrf.mxu2 }
 0x119   : > { %v714_v31 = vadd.f32 %v713_v30, %v666_v29  ;;  %v761_v32 = vpop.f32.mrf.mxu3  ;;  %v620_v33 = vpop.f32.mrf.mxu0 }
 0x11a   : > { %v668_v34 = vpop.f32.mrf.mxu1 }
 0x11b   : > { %v1898_v40 = vadd.f32 %v761_v32, %v714_v31  ;;  %v669_v41 = vadd.f32 %v668_v34, %v620_v33 }
 0x11c   : > { %811 = vmatmul.bf16.gmra.mxu0 %v1818_v8 }
 0x11d   : > { %859 = vmatmul.bf16.gmra.mxu1 %v1820_v9  ;;  %907 = vmatmul.bf16.gmra.mxu2 %v1822_v10 }
 0x11e   : > { %955 = vmatmul.bf16.gmra.mxu3 %v1824_v11 }
 0x120   : > { %v716_v42 = vpop.f32.mrf.mxu2 }
 0x121   : > { %v717_v43 = vadd.f32 %v716_v42, %v669_v41  ;;  %v764_v35 = vpop.f32.mrf.mxu3  ;;  %v622_v36 = vpop.f32.mrf.mxu0 }
 0x122   : > { %v670_v24 = vpop.f32.mrf.mxu1 }
 0x123   : > { %v765_v37 = vadd.f32 %v764_v35, %v717_v43  ;;  %v671_v38 = vadd.f32 %v670_v24, %v622_v36 }
 0x125   : > { %1018 = vrot.lane.b32.xlu1 %v765_v37, %s1524_s26 }
 0x128   : > { %v718_v25 = vpop.f32.mrf.mxu2 }
 0x129   : > { %v719_v39 = vadd.f32 %v718_v25, %v671_v38  ;;  %v766_v8 = vpop.f32.mrf.mxu3  ;;  %v625_v26 = vpop.f32.mrf.mxu0 }
 0x12a   : > { %v673_v27 = vpop.f32.mrf.mxu1 }
 0x12b   : > { %v767_v9 = vadd.f32 %v766_v8, %v719_v39  ;;  %v674_v10 = vadd.f32 %v673_v27, %v625_v26 }
 0x12c   : > { %816 = vmatmul.bf16.gmra.mxu0 %v1838_v44 }
 0x12d   : > { %864 = vmatmul.bf16.gmra.mxu1 %v1840_v45  ;;  %912 = vmatmul.bf16.gmra.mxu2 %v1842_v46 }
 0x12e   : > { %960 = vmatmul.bf16.gmra.mxu3 %v1844_v47  ;;  %1020 = vrot.lane.b32.xlu2 %v767_v9, %s1524_s26 }
 0x130   : > { %v721_v11 = vpop.f32.mrf.mxu2 }
 0x131   : > { %v722_v55 = vadd.f32 %v721_v11, %v674_v10  ;;  %v769_v56 = vpop.f32.mrf.mxu3  ;;  %v627_v58 = vpop.f32.mrf.mxu0 }
 0x132   : > { %v675_v59 = vpop.f32.mrf.mxu1 }
 0x133   : > { %v770_v60 = vadd.f32 %v769_v56, %v722_v55  ;;  %v676_v61 = vadd.f32 %v675_v59, %v627_v58 }
 0x135   : > { %1022 = vrot.lane.b32.xlu0 %v770_v60, %s1524_s26 }
 0x138   : > { %v723_v2 = vpop.f32.mrf.mxu2 }
 0x139   : > { %v724_v44 = vadd.f32 %v723_v2, %v676_v61  ;;  %v771_v49 = vpop.f32.mrf.mxu3  ;;  %v630_v3 = vpop.f32.mrf.mxu0 }
 0x13a   : > { %v678_v45 = vpop.f32.mrf.mxu1 }
 0x13b   : > { %v772_v4 = vadd.f32 %v771_v49, %v724_v44  ;;  %v679_v46 = vadd.f32 %v678_v45, %v630_v3 }
 0x13c   : > { %821 = vmatmul.bf16.gmra.mxu0 %v1850_v62 }
 0x13d   : > { %869 = vmatmul.bf16.gmra.mxu1 %v1852_v63  ;;  %917 = vmatmul.bf16.gmra.mxu2 %v1854_v0 }
 0x13e   : > { %965 = vmatmul.bf16.gmra.mxu3 %v1856_v1  ;;  %1024 = vrot.lane.b32.xlu1 %v772_v4, %s1524_s26 }
 0x140   : > { %v726_v47 = vpop.f32.mrf.mxu2 }
 0x141   : > { %v727_v50 = vadd.f32 %v726_v47, %v679_v46  ;;  %v774_v51 = vpop.f32.mrf.mxu3  ;;  %v632_v52 = vpop.f32.mrf.mxu0 }
 0x142   : > { %v680_v6 = vpop.f32.mrf.mxu1 }
 0x143   : > { %v775_v7 = vadd.f32 %v774_v51, %v727_v50 }
 0x145   : > { %1026 = vrot.lane.b32.xlu2 %v775_v7, %s1524_s26 }
 0x148   : > { %v728_v16 = vpop.f32.mrf.mxu2 }
 0x149   : > { %v776_v17 = vpop.f32.mrf.mxu3  ;;  %v787_v62 = vpop.f32.mrf.mxu0 }
 0x14a   : > { %v835_v19 = vpop.f32.mrf.mxu1 }
 0x14b   : > { %v836_v20 = vadd.f32 %v835_v19, %v787_v62 }
 0x150   : > { %v883_v63 = vpop.f32.mrf.mxu2 }
 0x151   : > { %v884_v48 = vadd.f32 %v883_v63, %v836_v20  ;;  %v931_v0 = vpop.f32.mrf.mxu3  ;;  %v789_v21 = vpop.f32.mrf.mxu0 }
 0x152   : > { %v837_v1 = vpop.f32.mrf.mxu1 }
 0x153   : > { %v932_v22 = vadd.f32 %v931_v0, %v884_v48  ;;  %v838_v53 = vadd.f32 %v837_v1, %v789_v21 }
 0x155   : > { %985 = vrot.lane.b32.xlu2 %v932_v22, %s1523_s25 }
 0x158   : > { %v885_v13 = vpop.f32.mrf.mxu2 }
 0x159   : > { %v886_v14 = vadd.f32 %v885_v13, %v838_v53  ;;  %v933_v15 = vpop.f32.mrf.mxu3  ;;  %v792_v23 = vpop.f32.mrf.mxu0 }
 0x15a   : > { %v840_v54 = vpop.f32.mrf.mxu1 }
 0x15b   : > { %v934_v28 = vadd.f32 %v933_v15, %v886_v14  ;;  %v841_v29 = vadd.f32 %v840_v54, %v792_v23 }
 0x15d   : > { %987 = vrot.lane.b32.xlu0 %v934_v28, %s1523_s25 }
 0x160   : > { %v888_v30 = vpop.f32.mrf.mxu2 }
 0x161   : > { %v889_v31 = vadd.f32 %v888_v30, %v841_v29  ;;  %v936_v32 = vpop.f32.mrf.mxu3  ;;  %v794_v33 = vpop.f32.mrf.mxu0 }
 0x162   : > { %v842_v34 = vpop.f32.mrf.mxu1 }
 0x163   : > { %v937_v41 = vadd.f32 %v936_v32, %v889_v31  ;;  %v843_v42 = vadd.f32 %v842_v34, %v794_v33 }
 0x165   : > { %989 = vrot.lane.b32.xlu1 %v937_v41, %s1523_s25 }
 0x168   : > { %v890_v43 = vpop.f32.mrf.mxu2 }
 0x169   : > { %v891_v35 = vadd.f32 %v890_v43, %v843_v42  ;;  %v938_v36 = vpop.f32.mrf.mxu3  ;;  %v797_v24 = vpop.f32.mrf.mxu0 }
 0x16a   : > { %v845_v37 = vpop.f32.mrf.mxu1 }
 0x16b   : > { %v939_v38 = vadd.f32 %v938_v36, %v891_v35  ;;  %v846_v25 = vadd.f32 %v845_v37, %v797_v24 }
 0x16d   : > { %991 = vrot.lane.b32.xlu2 %v939_v38, %s1523_s25 }
 0x170   : > { %v893_v39 = vpop.f32.mrf.mxu2 }
 0x171   : > { %v894_v8 = vadd.f32 %v893_v39, %v846_v25  ;;  %v941_v26 = vpop.f32.mrf.mxu3  ;;  %v799_v27 = vpop.f32.mrf.mxu0 }
 0x172   : > { %v847_v9 = vpop.f32.mrf.mxu1 }
 0x173   : > { %v942_v10 = vadd.f32 %v941_v26, %v894_v8  ;;  %v848_v11 = vadd.f32 %v847_v9, %v799_v27  ;;  %v1081_v26 = vld [vmem:[%s2080_s2 + $0x10] sm:$0xff] }
 0x175   : > { %993 = vrot.lane.b32.xlu0 %v942_v10, %s1523_s25 }
 0x178   : > { %v895_v55 = vpop.f32.mrf.mxu2 }
 0x179   : > { %v896_v56 = vadd.f32 %v895_v55, %v848_v11  ;;  %v943_v58 = vpop.f32.mrf.mxu3  ;;  %v802_v59 = vpop.f32.mrf.mxu0 }
 0x17a   : > { %v850_v60 = vpop.f32.mrf.mxu1 }
 0x17b   : > { %v1922_v61 = vadd.f32 %v943_v58, %v896_v56  ;;  %v851_v2 = vadd.f32 %v850_v60, %v802_v59  ;;  %v1082_v59 = vld [vmem:[%s2080_s2 + $0x18] sm:$0xff] }
 0x180   : > { %v898_v44 = vpop.f32.mrf.mxu2 }
 0x181   : > { %v899_v49 = vadd.f32 %v898_v44, %v851_v2  ;;  %v946_v3 = vpop.f32.mrf.mxu3  ;;  %v804_v45 = vpop.f32.mrf.mxu0 }
 0x182   : > { %v852_v4 = vpop.f32.mrf.mxu1 }
 0x183   : > { %v1924_v46 = vadd.f32 %v946_v3, %v899_v49  ;;  %v853_v47 = vadd.f32 %v852_v4, %v804_v45 }
 0x188   : > { %v900_v50 = vpop.f32.mrf.mxu2 }
 0x189   : > { %v901_v51 = vadd.f32 %v900_v50, %v853_v47  ;;  %v948_v52 = vpop.f32.mrf.mxu3  ;;  %v807_v6 = vpop.f32.mrf.mxu0  ;;  %v1080_v47 = vld [vmem:[%s2080_s2 + $0x8] sm:$0xff] }
 0x18a   : > { %v855_v7 = vpop.f32.mrf.mxu1 }
 0x18b   : > { %v1926_v16 = vadd.f32 %v948_v52, %v901_v51  ;;  %v856_v17 = vadd.f32 %v855_v7, %v807_v6  ;;  %v1083_v6 = vld [vmem:[%s2080_s2 + $0x20] sm:$0xff]  ;;  %v1087_v7 = vpop.permute.xlu2 %1086 }
 0x190   : > { %v903_v62 = vpop.f32.mrf.mxu2 }
 0x191   : > { %v904_v19 = vadd.f32 %v903_v62, %v856_v17  ;;  %v951_v20 = vpop.f32.mrf.mxu3  ;;  %v809_v63 = vpop.f32.mrf.mxu0 }
 0x192   : > { %v857_v48 = vpop.f32.mrf.mxu1  ;;  %v976_v17 = vpop.permute.xlu0 %975 }
 0x193   : > { %v1928_v0 = vadd.f32 %v951_v20, %v904_v19  ;;  %v858_v21 = vadd.f32 %v857_v48, %v809_v63  ;;  %v1949_v62 = vpop.permute.xlu2 %983  ;;  %v980_v19 = vpop.permute.xlu1 %979 }
 0x198   : > { %v905_v1 = vpop.f32.mrf.mxu2 }
 0x199   : > { %v906_v22 = vadd.f32 %v905_v1, %v858_v21  ;;  %v953_v53 = vpop.f32.mrf.mxu3  ;;  %v812_v13 = vpop.f32.mrf.mxu0 }
 0x19a   : > { %v860_v14 = vpop.f32.mrf.mxu1  ;;  %v1951_v20 = vpop.permute.xlu0 %977 }
 0x19b   : > { %v1930_v15 = vadd.f32 %v953_v53, %v906_v22  ;;  %v861_v23 = vadd.f32 %v860_v14, %v812_v13  ;;  %v1953_v63 = vpop.permute.xlu2 %1020  ;;  %v982_v48 = vpop.permute.xlu1 %981  ;;  %v970_v22 = vlaneseq }
 0x19d   : > { %v1957_v14 = vand.u32 127, %v970_v22 }
 0x19f   : > { %vm995_vm0 = vcmp.lt.s32.totalorder %v1957_v14, 1  ;;  %vm973_vm1 = vcmp.eq.s32.totalorder %v1957_v14, 0  ;;  %vm1038_vm2 = vcmp.lt.s32.totalorder %v1957_v14, 127 }
 0x1a0   : > { %v908_v54 = vpop.f32.mrf.mxu2 }
 0x1a1   : > { %v909_v28 = vadd.f32 %v908_v54, %v861_v23  ;;  %v956_v29 = vpop.f32.mrf.mxu3  ;;  %v814_v30 = vpop.f32.mrf.mxu0 }
 0x1a2   : > { %v862_v31 = vpop.f32.mrf.mxu1 }
 0x1a3   : > { %v957_v32 = vadd.f32 %v956_v29, %v909_v28  ;;  %v863_v33 = vadd.f32 %v862_v31, %v814_v30  ;;  %v1955_v1 = vpop.permute.xlu2 %1026  ;;  %v1019_v53 = vpop.permute.xlu1 %1018  ;;  %v1970_v31 = vadd.s32 128, %v1957_v14 }
 0x1a5   : > { %1028 = vrot.lane.b32.xlu0 %v957_v32, %s1524_s26  ;;  %vm1017_vm3 = vcmp.eq.s32.totalorder %v1970_v31, 255 }
 0x1a7   : > { %v1023_v21 = vpop.permute.xlu0 %1022 }
 0x1a8   : > { %v910_v34 = vpop.f32.mrf.mxu2 }
 0x1a9   : > { %v911_v41 = vadd.f32 %v910_v34, %v863_v33  ;;  %v958_v42 = vpop.f32.mrf.mxu3  ;;  %v817_v43 = vpop.f32.mrf.mxu0 }
 0x1aa   : > { %v865_v35 = vpop.f32.mrf.mxu1 }
 0x1ab   : > { %v959_v36 = vadd.f32 %v958_v42, %v911_v41  ;;  %v866_v24 = vadd.f32 %v865_v35, %v817_v43 }
 0x1ad   : > { %1030 = vrot.lane.b32.xlu1 %v959_v36, %s1524_s26 }
 0x1af   : > { %v986_v23 = vpop.permute.xlu2 %985 }
 0x1b0   : > { %v913_v37 = vpop.f32.mrf.mxu2  ;;  %v1025_v54 = vpop.permute.xlu1 %1024  ;;  %v1001_v29 = vsel %vm995_vm0, %v986_v23, %v976_v17  ;;  %v996_v32 = vsel %vm995_vm0, %v976_v17, %v986_v23 }
 0x1b1   : > { %v914_v38 = vadd.f32 %v913_v37, %v866_v24  ;;  %v961_v25 = vpop.f32.mrf.mxu3  ;;  %v819_v39 = vpop.f32.mrf.mxu0  ;;  %v1006_v30 = vsel %vm973_vm1, 0.0, %v1001_v29  ;;  %v1060_v43 = vadd.f32 %v996_v32, %v1922_v61 }
 0x1b2   : > { %v867_v8 = vpop.f32.mrf.mxu1  ;;  %v1059_v34 = vadd.f32 %v1006_v30, %v1882_v5 }
 0x1b3   : > { %v962_v27 = vadd.f32 %v961_v25, %v914_v38  ;;  %v868_v9 = vadd.f32 %v867_v8, %v819_v39 }
 0x1b5   : > { %1096 = vperm.xlu1 %1418, %v1081_v26   ;;  %1032 = vrot.lane.b32.xlu2 %v962_v27, %s1524_s26 }
 0x1b8   : > { %v915_v10 = vpop.f32.mrf.mxu2 }
 0x1b9   : > { %v916_v11 = vadd.f32 %v915_v10, %v868_v9  ;;  %v963_v55 = vpop.f32.mrf.mxu3  ;;  %v822_v56 = vpop.f32.mrf.mxu0 }
 0x1ba   : > { %v870_v58 = vpop.f32.mrf.mxu1 }
 0x1bb   : > { %v964_v60 = vadd.f32 %v963_v55, %v916_v11  ;;  %v871_v2 = vadd.f32 %v870_v58, %v822_v56 }
 0x1bd   : > { %1101 = vperm.xlu2 %1416, %v1082_v59   ;;  %1034 = vrot.lane.b32.xlu0 %v964_v60, %s1524_s26 }
 0x1c0   : > { %v918_v44 = vpop.f32.mrf.mxu2 }
 0x1c1   : > { %v919_v49 = vadd.f32 %v918_v44, %v871_v2  ;;  %v966_v3 = vpop.f32.mrf.mxu3  ;;  %v824_v45 = vpop.f32.mrf.mxu0 }
 0x1c2   : > { %v872_v4 = vpop.f32.mrf.mxu1 }
 0x1c3   : > { %v967_v50 = vadd.f32 %v966_v3, %v919_v49 }
 0x1c5   : > { %1091 = vperm.xlu0 %1417, %v1080_v47   ;;  %1036 = vrot.lane.b32.xlu1 %v967_v50, %s1524_s26 }
 0x1c7   : > { %v992_v33 = vpop.permute.xlu2 %991 }
 0x1c8   : > { %v920_v51 = vpop.f32.mrf.mxu2  ;;  %v1004_v49 = vsel %vm995_vm0, %v992_v33, %v982_v48  ;;  %v999_v45 = vsel %vm995_vm0, %v982_v48, %v992_v33 }
 0x1c9   : > { %v968_v52 = vpop.f32.mrf.mxu3  ;;  %v1012_v3 = vsel %vm973_vm1, 0.0, %v1004_v49  ;;  %v1066_v47 = vadd.f32 %v999_v45, %v1928_v0 }
 0x1cd   : > { %1106 = vperm.xlu1 %1418, %v1083_v6  }
 0x1cf   : > { %v988_v13 = vpop.permute.xlu0 %987 }
 0x1d0   : > { %v997_v6 = vsel %vm995_vm0, %v1951_v20, %v988_v13 }
 0x1d7   : > { %v990_v41 = vpop.permute.xlu1 %989 }
 0x1d8   : > { %v1003_v39 = vsel %vm995_vm0, %v990_v41, %v980_v19  ;;  %v998_v27 = vsel %vm995_vm0, %v980_v19, %v990_v41 }
 0x1d9   : > { %v1010_v9 = vsel %vm973_vm1, 0.0, %v1003_v39  ;;  %v1064_v56 = vadd.f32 %v998_v27, %v1926_v16  ;;  %v1065_v16 = vadd.f32 %v1012_v3, %v1896_v57 }
 0x1da   : > { %v1063_v55 = vadd.f32 %v1010_v9, %v1890_v12  ;;  %v1002_v12 = vsel %vm995_vm0, %v988_v13, %v1951_v20 }
 0x1db   : > { %v1008_v57 = vsel %vm973_vm1, 0.0, %v1002_v12 }
 0x1dc   : > { %v1061_v20 = vadd.f32 %v1008_v57, %v1888_v18 }
 0x1e7   : > { %v1961_v28 = vpop.permute.xlu0 %993 }
 0x1e8   : > { %v1005_v23 = vsel %vm995_vm0, %v1961_v28, %v1949_v62 }
 0x20f   : > { %v1033_v25 = vpop.permute.xlu2 %1032 }
 0x210   : > { %v1046_v26 = vsel %vm1038_vm2, %v1033_v25, %v1023_v21  ;;  %v1041_v10 = vsel %vm1038_vm2, %v1023_v21, %v1033_v25 }
 0x211   : > { %v1054_v11 = vsel %vm1017_vm3, 0.0, %v1046_v26  ;;  %v1073_v58 = vadd.f32 %v1063_v55, %v1041_v10 }
 0x212   : > { %v1074_v59 = vadd.f32 %v1064_v56, %v1054_v11 }
 0x217   : > { %v1029_v42 = vpop.permute.xlu0 %1028  ;;  %v1102_v17 = vpop.permute.xlu2 %1101 }
 0x218   : > { %v1039_v35 = vsel %vm1038_vm2, %v1019_v53, %v1029_v42  ;;  %v1044_v36 = vsel %vm1038_vm2, %v1029_v42, %v1019_v53  ;;  %v1062_v53 = vadd.f32 %v997_v6, %v1924_v46  ;;  %v1000_v46 = vsel %vm995_vm0, %v1949_v62, %v1961_v28 }
 0x219   : > { %v1050_v24 = vsel %vm1017_vm3, 0.0, %v1044_v36  ;;  %v1069_v37 = vadd.f32 %v1059_v34, %v1039_v35  ;;  %v1014_v34 = vsel %vm973_vm1, 0.0, %v1005_v23  ;;  %v1068_v35 = vadd.f32 %v1000_v46, %v1930_v15 }
 0x21a   : > { %v1070_v5 = vadd.f32 %v1060_v43, %v1050_v24  ;;  %v1067_v43 = vadd.f32 %v1014_v34, %v1898_v40 }
 0x21b   : > { %v1109_v61 = vadd.f32 %v1087_v7, %v1069_v37 }
 0x21c   : > { %v1110_v38 = vadd.f32 %v1087_v7, %v1070_v5 }
 0x21d   : > { %1119 = vst [vmem:[%s1987_s22] sm:$0xff] %v1109_v61 }
 0x21e   : > { %1120 = vst [vmem:[%s1987_s22 + $0x8] sm:$0xff] %v1110_v38 }
 0x21f   : > { %v1031_v8 = vpop.permute.xlu1 %1030 }
 0x220   : > { %v1045_v50 = vsel %vm1038_vm2, %v1031_v8, %v1953_v63  ;;  %v1040_v48 = vsel %vm1038_vm2, %v1953_v63, %v1031_v8 }
 0x221   : > { %v1052_v21 = vsel %vm1017_vm3, 0.0, %v1045_v50 }
 0x222   : > { %v1072_v63 = vadd.f32 %v1062_v53, %v1052_v21 }
 0x227   : > { %v1097_v60 = vpop.permute.xlu1 %1096 }
 0x228   : > { %v1113_v2 = vadd.f32 %v1097_v60, %v1073_v58  ;;  %v1114_v44 = vadd.f32 %v1097_v60, %v1074_v59 }
 0x22a   : > { %1123 = vst [vmem:[%s1987_s22 + $0x20] sm:$0xff] %v1113_v2 }
 0x22b   : > { %1124 = vst [vmem:[%s1987_s22 + $0x28] sm:$0xff] %v1114_v44 }
 0x22f   : > { %v1035_v4 = vpop.permute.xlu0 %1034 }
 0x230   : > { %v1042_v51 = vsel %vm1038_vm2, %v1025_v54, %v1035_v4  ;;  %v1047_v52 = vsel %vm1038_vm2, %v1035_v4, %v1025_v54  ;;  %v1071_v54 = vadd.f32 %v1061_v20, %v1040_v48 }
 0x231   : > { %v1056_v0 = vsel %vm1017_vm3, 0.0, %v1047_v52  ;;  %v1075_v7 = vadd.f32 %v1065_v16, %v1042_v51 }
 0x232   : > { %v1076_v19 = vadd.f32 %v1066_v47, %v1056_v0 }
 0x233   : > { %v1115_v22 = vadd.f32 %v1102_v17, %v1075_v7 }
 0x234   : > { %v1116_v13 = vadd.f32 %v1102_v17, %v1076_v19 }
 0x235   : > { %1125 = vst [vmem:[%s1987_s22 + $0x30] sm:$0xff] %v1115_v22 }
 0x236   : > { %1126 = vst [vmem:[%s1987_s22 + $0x38] sm:$0xff] %v1116_v13 }
 0x237   : > { %v1092_v29 = vpop.permute.xlu0 %1091  ;;  %v1037_v30 = vpop.permute.xlu1 %1036 }
 0x238   : > { %v1111_v32 = vadd.f32 %v1092_v29, %v1071_v54  ;;  %v1112_v33 = vadd.f32 %v1092_v29, %v1072_v63  ;;  %v1048_v18 = vsel %vm1038_vm2, %v1037_v30, %v1955_v1  ;;  %v1043_v41 = vsel %vm1038_vm2, %v1955_v1, %v1037_v30 }
 0x239   : > { %v1058_v42 = vsel %vm1017_vm3, 0.0, %v1048_v18  ;;  %v1077_v36 = vadd.f32 %v1067_v43, %v1043_v41 }
 0x23a   : > { %1121 = vst [vmem:[%s1987_s22 + $0x10] sm:$0xff] %v1111_v32  ;;  %v1078_v24 = vadd.f32 %v1068_v35, %v1058_v42 }
 0x23b   : > { %1122 = vst [vmem:[%s1987_s22 + $0x18] sm:$0xff] %v1112_v33 }
 0x23f   : > { %v1107_v37 = vpop.permute.xlu1 %1106 }
 0x240   : > { %v1117_v62 = vadd.f32 %v1107_v37, %v1077_v36  ;;  %v1118_v28 = vadd.f32 %v1107_v37, %v1078_v24 }
 0x242   : > { %1127 = vst [vmem:[%s1987_s22 + $0x40] sm:$0x3] %v1117_v62 }
 0x243   : > { %1128 = vst [vmem:[%s1987_s22 + $0x48] sm:$0x3] %v1118_v28 }
 0x244 PF: > { %p14_p4 = scmp.ge.s32.totalorder %s1588_s24, 4   ;;  %s2085_s12 = smov %s1509_s13 }
 0x245   : > { %s2086_s13 = smov %s1513_s14  ;;  %s2087_s14 = smov %s1601_s29 }
 0x246   : > { %s2088_s15 = smov %s1588_s24  ;;  %16 = sbr.rel (!%p14_p4) target bundleno = 4 (0x4), region = 76 }
 0x24b   :  { %1150 = vsyncpa [#allocation3], 1 }
 0x24c   :  { %1152 = vsyncpa [#allocation3 + $0x1], 1 }
 0x24d   :  { %1153 = vsyncpa [#allocation5], 1 }

</bundles_post_ra>
